<compile_context>
chip_gen: v6e
topology: v6e:2x2x1
jax: 0.10.0
libtpu: 0.0.40
codegen_flags: <defaults>
</compile_context>

<pallas_src>
import functools

import jax
import jax.numpy as jnp
from jax.experimental import pallas as pl
from jax.experimental.pallas import tpu as pltpu


def _round_up(x, m):
    return ((x + m - 1) // m) * m


# ---------------------------------------------------------------------------
# Kernel
# ---------------------------------------------------------------------------
def _mlp_kernel(x_ref,
                w12_0, w3_0,
                w12_1, w3_1,
                w12_2, w3_2,
                o_ref, *, hidden, bf16_gate):
    """out = block2(block1(block0(x))), block(y) = (silu(y@W1) * (y@W2)) @ W3 + y.

    W1 and W2 are packed into w12 = [D, 2H]: one MXU matmul produces both
    up-projections, then static lane-aligned slices split them.  MXU inputs are
    bf16 with f32 accumulation; the residual carry stays in f32.  On chips with
    a bf16 VPU/EUP (v6e/v7x) the gate math runs in bf16 (halves VALU work and
    vreg pressure); on v5e it stays in f32.
    """
    out = x_ref[...].astype(jnp.float32)                      # f32 residual carry
    for w12_ref, w3_ref in ((w12_0, w3_0), (w12_1, w3_1), (w12_2, w3_2)):
        h = jnp.dot(out.astype(jnp.bfloat16), w12_ref[...],
                    preferred_element_type=jnp.float32)       # [tm, 2H], f32 acc
        h1 = h[:, :hidden]                                    # static, lane-aligned
        h2 = h[:, hidden:]
        if bf16_gate:
            h1b = h1.astype(jnp.bfloat16)
            gated = h1b * jax.nn.sigmoid(h1b) * h2.astype(jnp.bfloat16)
        else:
            gated = (h1 * jax.nn.sigmoid(h1) * h2).astype(jnp.bfloat16)
        out = jnp.dot(gated, w3_ref[...],
                      preferred_element_type=jnp.float32) + out
    o_ref[...] = out.astype(o_ref.dtype)


# ---------------------------------------------------------------------------
# Spec / call construction
# ---------------------------------------------------------------------------
_HAS_BUFFERED = hasattr(pl, "Buffered")


def _weight_spec(shape, single_buffer):
    # Constant index_map: the weight block never changes across the grid, so one
    # resident VMEM buffer suffices (default would double-buffer each weight).
    if single_buffer and _HAS_BUFFERED:
        try:
            return pl.BlockSpec(shape, lambda i: (0, 0),
                                pipeline_mode=pl.Buffered(1))
        except (TypeError, ValueError):
            pass
    return pl.BlockSpec(shape, lambda i: (0, 0))


def _build_call(B_pad, D, H, tm, in_dtype, out_dtype, vmem_limit, bf16_gate,
                single_buffer_weights):
    del in_dtype  # input dtype is carried by the array itself
    x_spec = pl.BlockSpec((tm, D), lambda i: (i, 0))

    w_specs = []
    for _ in range(3):
        w_specs.append(_weight_spec((D, 2 * H), single_buffer_weights))  # W1||W2
        w_specs.append(_weight_spec((H, D), single_buffer_weights))      # W3

    return pl.pallas_call(
        functools.partial(_mlp_kernel, hidden=H, bf16_gate=bf16_gate),
        out_shape=jax.ShapeDtypeStruct((B_pad, D), out_dtype),
        grid_spec=pltpu.PrefetchScalarGridSpec(
            num_scalar_prefetch=0,
            grid=(B_pad // tm,),
            in_specs=[x_spec] + w_specs,
            out_specs=x_spec,
        ),
        compiler_params=pltpu.CompilerParams(
            # Batch axis is embarrassingly parallel -> megacore sharding on v7x.
            dimension_semantics=("parallel",),
            vmem_limit_bytes=vmem_limit,
        ),
    )


# ---------------------------------------------------------------------------
# Hardware-aware policy helpers
# ---------------------------------------------------------------------------
def _vmem_ceiling_bytes():
    """Generation-aware VMEM cap with headroom for Mosaic internal scratch."""
    try:
        cap = int(pltpu.get_tpu_info().vmem_capacity_bytes)
    except Exception:
        cap = 128 * 1024 * 1024
    return int(cap * 0.8)   # ~51 MiB on v7x (64 MiB), ~102 MiB on v5e/v6e (128 MiB)


def _has_bf16_vpu():
    """bf16 VPU/EUP exists on v6e/v7x; v5e has neither -> keep f32 gate there."""
    try:
        kind = jax.devices()[0].device_kind.lower()
    except Exception:
        return True
    return not any(tag in kind for tag in ("v5e", "v5 lite", "v5lite"))


def _choose_tiling(B, tm_target):
    """Pick (tm, B_pad) with tm | B_pad, tm % 8 == 0, minimal padding.

    Prefers a divisor of round_up(B, 8) (pads at most 7 rows) over padding a
    whole extra tile, keeps tiles large (step overhead ~0.35us/step), and
    guarantees >=2 grid steps for large batches so both v7x cores are used.
    """
    tm_target = max(8, _round_up(tm_target, 8))
    B8 = _round_up(B, 8)
    if B8 <= tm_target:
        if B8 >= 512 and B8 % 16 == 0:
            return B8 // 2, B8          # 2 steps -> megacore on v7x
        return B8, B8
    # Look for a big divisor of B8 (no full-array pad copy needed).
    for cand in range(tm_target, max(8, tm_target // 4) - 1, -8):
        if B8 % cand == 0:
            return cand, B8
    # Fallback: pad up to a multiple of tm_target (grid >= 2 automatically).
    return tm_target, _round_up(B, tm_target)


# ---------------------------------------------------------------------------
# Public wrapper
# ---------------------------------------------------------------------------
def mlp_pallas(x, packed_params, *, tm=512, out_dtype=None,
               single_buffer_weights=True):
    """x: [B, D]; packed_params: 3 tuples (w12 [D, 2H] bf16, w3 [H, D] bf16).

    The kernel reads x in whatever dtype the caller supplies (pass bf16 to
    halve input HBM traffic) and writes `out_dtype` (default: same as x).
    """
    B, D = x.shape
    H = packed_params[0][1].shape[0]
    assert D % 128 == 0, f"D (={D}) must be a multiple of 128 (lane width)"
    assert H % 128 == 0, f"H (={H}) must be a multiple of 128 for a free h1/h2 split"
    if out_dtype is None:
        out_dtype = x.dtype

    tm_eff, B_pad = _choose_tiling(B, tm)
    x_pad = x if B_pad == B else jnp.pad(x, ((0, B_pad - B), (0, 0)))

    flat_w = [w for blk in packed_params for w in blk]

    # VMEM budget: weights (x2 covers the double-buffered fallback) +
    # double-buffered in/out activation tiles + f32 intermediates, 2x headroom,
    # capped generation-aware below physical VMEM.
    weight_bytes = sum(int(w.size) * w.dtype.itemsize for w in flat_w)
    act_bytes = 2 * tm_eff * D * (x.dtype.itemsize + jnp.dtype(out_dtype).itemsize)
    interm_bytes = tm_eff * (4 * H + 2 * D) * 4
    need = 2 * (2 * weight_bytes + act_bytes + interm_bytes)
    vmem_limit = int(min(max(need, 32 * 1024 * 1024), _vmem_ceiling_bytes()))

    bf16_gate = _has_bf16_vpu()

    call = _build_call(B_pad, D, H, tm_eff, x.dtype, jnp.dtype(out_dtype),
                       vmem_limit, bf16_gate, single_buffer_weights)
    try:
        out = call(x_pad, *flat_w)
    except pltpu.LoweringException:
        # Buffered(1) weight specs unsupported in this lowering -> default
        # double-buffered weight specs.  (Narrow catch: real OOM/compile bugs
        # still propagate.)
        if not single_buffer_weights:
            raise
        call = _build_call(B_pad, D, H, tm_eff, x.dtype, jnp.dtype(out_dtype),
                           vmem_limit, bf16_gate, False)
        out = call(x_pad, *flat_w)
    return out[:B]


# ---------------------------------------------------------------------------
# Parameter helpers + references
# ---------------------------------------------------------------------------
def init_params(key, input_size, hidden_size):
    """nn.Linear-style uniform(+-1/sqrt(fan_in)) init; weights stored as [in, out]."""
    params = []
    for _ in range(3):  # 3 MLPBlocks
        key, k1, k2, k3 = jax.random.split(key, 4)
        b1 = 1.0 / jnp.sqrt(input_size)
        b3 = 1.0 / jnp.sqrt(hidden_size)
        w1 = jax.random.uniform(k1, (input_size, hidden_size), jnp.float32, -b1, b1)
        w2 = jax.random.uniform(k2, (input_size, hidden_size), jnp.float32, -b1, b1)
        w3 = jax.random.uniform(k3, (hidden_size, input_size), jnp.float32, -b3, b3)
        params.append((w1, w2, w3))
    return params


def pack_params(params, dtype=jnp.bfloat16):
    """Pack (W1, W2) -> [D, 2H] and cast MXU weights to bf16."""
    packed = []
    for w1, w2, w3 in params:
        packed.append((jnp.concatenate([w1, w2], axis=1).astype(dtype),
                       w3.astype(dtype)))
    return packed


def mlp_reference_f32(x, params):
    out = x.astype(jnp.float32)
    for w1, w2, w3 in params:
        out = (jax.nn.silu(out @ w1) * (out @ w2)) @ w3 + out
    return out


def mlp_reference_mxu(x, packed_params, hidden, *, bf16_gate, out_dtype):
    """Mirrors kernel numerics: bf16 MXU operands, f32 accumulation, bf16 gate opt."""
    out = x.astype(jnp.float32)
    for w12, w3 in packed_params:
        h = jnp.dot(out.astype(jnp.bfloat16), w12,
                    preferred_element_type=jnp.float32)
        h1, h2 = h[:, :hidden], h[:, hidden:]
        if bf16_gate:
            h1b = h1.astype(jnp.bfloat16)
            gated = h1b * jax.nn.sigmoid(h1b) * h2.astype(jnp.bfloat16)
        else:
            gated = (h1 * jax.nn.sigmoid(h1) * h2).astype(jnp.bfloat16)
        out = jnp.dot(gated, w3, preferred_element_type=jnp.float32) + out
    return out.astype(out_dtype)


# ---------------------------------------------------------------------------
# Self-test
# ---------------------------------------------------------------------------
if __name__ == "__main__":
    # embed_net = MLP(n_classes, 2 * n_classes) inside ContrastiveGuidedDiffusion.
    n_classes = 128
    B, D, H = 8, n_classes, 2 * n_classes      # small test shapes
    key = jax.random.PRNGKey(0)
    key, xk = jax.random.split(key)
    x_f32 = jax.random.normal(xk, (B, D), jnp.float32)
    params = init_params(key, D, H)
    packed = pack_params(params)

    # bf16 activation I/O at the pallas_call boundary (halves HBM traffic).
    x_bf16 = x_f32.astype(jnp.bfloat16)
    out = mlp_pallas(x_bf16, packed, out_dtype=jnp.bfloat16)
    out = jax.block_until_ready(out)
    assert out.shape == (B, D)
    out_f32 = out.astype(jnp.float32)

    bf16_gate = _has_bf16_vpu()
    ref_mxu = mlp_reference_mxu(x_bf16, packed, H,
                                bf16_gate=bf16_gate, out_dtype=jnp.bfloat16)
    err_mxu = jnp.max(jnp.abs(out_f32 - ref_mxu.astype(jnp.float32)))
    assert err_mxu < 2e-2, f"max err vs mxu ref {err_mxu}"

    ref_f32 = mlp_reference_f32(x_bf16, params)
    err_f32 = jnp.max(jnp.abs(out_f32 - ref_f32))
    assert err_f32 < 1e-1, f"max err vs f32 ref {err_f32}"

    print("KERNEL_OK")
</pallas_src>

<mosaic_0001>
module attributes {stable_mosaic.version = 11 : i64} {
  func.func @_mlp_kernel(%arg0: i32, %arg1: memref<8x128xbf16, #tpu.memory_space<vmem>>, %arg2: memref<128x512xbf16, #tpu.memory_space<vmem>>, %arg3: memref<256x128xbf16, #tpu.memory_space<vmem>>, %arg4: memref<128x512xbf16, #tpu.memory_space<vmem>>, %arg5: memref<256x128xbf16, #tpu.memory_space<vmem>>, %arg6: memref<128x512xbf16, #tpu.memory_space<vmem>>, %arg7: memref<256x128xbf16, #tpu.memory_space<vmem>>, %arg8: memref<8x128xbf16, #tpu.memory_space<vmem>>) attributes {dimension_semantics = [#tpu.dimension_semantics<parallel>], iteration_bounds = array<i64: 1>, scalar_prefetch = 0 : i64, scratch_operands = 0 : i64, tpu.core_type = #tpu.core_type<tc>, window_params = [{transform_indices = @transform_0, window_bounds = array<i64: 8, 128>}, {pipeline_mode = #tpu.pipeline_mode<synchronous>, transform_indices = @transform_1, window_bounds = array<i64: 128, 512>}, {pipeline_mode = #tpu.pipeline_mode<synchronous>, transform_indices = @transform_2, window_bounds = array<i64: 256, 128>}, {pipeline_mode = #tpu.pipeline_mode<synchronous>, transform_indices = @transform_3, window_bounds = array<i64: 128, 512>}, {pipeline_mode = #tpu.pipeline_mode<synchronous>, transform_indices = @transform_4, window_bounds = array<i64: 256, 128>}, {pipeline_mode = #tpu.pipeline_mode<synchronous>, transform_indices = @transform_5, window_bounds = array<i64: 128, 512>}, {pipeline_mode = #tpu.pipeline_mode<synchronous>, transform_indices = @transform_6, window_bounds = array<i64: 256, 128>}, {transform_indices = @transform_7, window_bounds = array<i64: 8, 128>}]} {
    %c0 = arith.constant 0 : index
    %c0_0 = arith.constant 0 : index
    %0 = vector.load %arg1[%c0, %c0_0] : memref<8x128xbf16, #tpu.memory_space<vmem>>, vector<8x128xbf16>
    %1 = arith.extf %0 : vector<8x128xbf16> to vector<8x128xf32>
    %2 = arith.truncf %1 : vector<8x128xf32> to vector<8x128xbf16>
    %c0_1 = arith.constant 0 : index
    %c0_2 = arith.constant 0 : index
    %3 = vector.load %arg2[%c0_1, %c0_2] : memref<128x512xbf16, #tpu.memory_space<vmem>>, vector<128x512xbf16>
    %cst = arith.constant dense<0.000000e+00> : vector<8x512xf32>
    %4 = tpu.matmul %2, %3, %cst {dimension_numbers = #tpu.dot_dimension_numbers<[1], [0], [0], [1], [0, 0, 1, 1], [], []>} : vector<8x128xbf16>, vector<128x512xbf16>, vector<8x512xf32> -> vector<8x512xf32>
    %5 = vector.extract_strided_slice %4 {offsets = [0, 0], sizes = [8, 256], strides = [1, 1]} : vector<8x512xf32> to vector<8x256xf32>
    %6 = vector.extract_strided_slice %4 {offsets = [0, 256], sizes = [8, 256], strides = [1, 1]} : vector<8x512xf32> to vector<8x256xf32>
    %7 = arith.truncf %5 : vector<8x256xf32> to vector<8x256xbf16>
    %8 = arith.negf %7 : vector<8x256xbf16>
    %9 = math.exp %8 : vector<8x256xbf16>
    %cst_3 = arith.constant 1.000000e+00 : bf16
    %10 = vector.broadcast %cst_3 : bf16 to vector<8x256xbf16>
    %11 = arith.addf %10, %9 : vector<8x256xbf16>
    %12 = arith.divf %10, %11 : vector<8x256xbf16>
    %13 = arith.mulf %7, %12 : vector<8x256xbf16>
    %14 = arith.truncf %6 : vector<8x256xf32> to vector<8x256xbf16>
    %15 = arith.mulf %13, %14 : vector<8x256xbf16>
    %c0_4 = arith.constant 0 : index
    %c0_5 = arith.constant 0 : index
    %16 = vector.load %arg3[%c0_4, %c0_5] : memref<256x128xbf16, #tpu.memory_space<vmem>>, vector<256x128xbf16>
    %cst_6 = arith.constant dense<0.000000e+00> : vector<8x128xf32>
    %17 = tpu.matmul %15, %16, %cst_6 {dimension_numbers = #tpu.dot_dimension_numbers<[1], [0], [0], [1], [0, 0, 1, 1], [], []>} : vector<8x256xbf16>, vector<256x128xbf16>, vector<8x128xf32> -> vector<8x128xf32>
    %18 = arith.addf %17, %1 : vector<8x128xf32>
    %19 = arith.truncf %18 : vector<8x128xf32> to vector<8x128xbf16>
    %c0_7 = arith.constant 0 : index
    %c0_8 = arith.constant 0 : index
    %20 = vector.load %arg4[%c0_7, %c0_8] : memref<128x512xbf16, #tpu.memory_space<vmem>>, vector<128x512xbf16>
    %cst_9 = arith.constant dense<0.000000e+00> : vector<8x512xf32>
    %21 = tpu.matmul %19, %20, %cst_9 {dimension_numbers = #tpu.dot_dimension_numbers<[1], [0], [0], [1], [0, 0, 1, 1], [], []>} : vector<8x128xbf16>, vector<128x512xbf16>, vector<8x512xf32> -> vector<8x512xf32>
    %22 = vector.extract_strided_slice %21 {offsets = [0, 0], sizes = [8, 256], strides = [1, 1]} : vector<8x512xf32> to vector<8x256xf32>
    %23 = vector.extract_strided_slice %21 {offsets = [0, 256], sizes = [8, 256], strides = [1, 1]} : vector<8x512xf32> to vector<8x256xf32>
    %24 = arith.truncf %22 : vector<8x256xf32> to vector<8x256xbf16>
    %25 = arith.negf %24 : vector<8x256xbf16>
    %26 = math.exp %25 : vector<8x256xbf16>
    %cst_10 = arith.constant 1.000000e+00 : bf16
    %27 = vector.broadcast %cst_10 : bf16 to vector<8x256xbf16>
    %28 = arith.addf %27, %26 : vector<8x256xbf16>
    %29 = arith.divf %27, %28 : vector<8x256xbf16>
    %30 = arith.mulf %24, %29 : vector<8x256xbf16>
    %31 = arith.truncf %23 : vector<8x256xf32> to vector<8x256xbf16>
    %32 = arith.mulf %30, %31 : vector<8x256xbf16>
    %c0_11 = arith.constant 0 : index
    %c0_12 = arith.constant 0 : index
    %33 = vector.load %arg5[%c0_11, %c0_12] : memref<256x128xbf16, #tpu.memory_space<vmem>>, vector<256x128xbf16>
    %cst_13 = arith.constant dense<0.000000e+00> : vector<8x128xf32>
    %34 = tpu.matmul %32, %33, %cst_13 {dimension_numbers = #tpu.dot_dimension_numbers<[1], [0], [0], [1], [0, 0, 1, 1], [], []>} : vector<8x256xbf16>, vector<256x128xbf16>, vector<8x128xf32> -> vector<8x128xf32>
    %35 = arith.addf %34, %18 : vector<8x128xf32>
    %36 = arith.truncf %35 : vector<8x128xf32> to vector<8x128xbf16>
    %c0_14 = arith.constant 0 : index
    %c0_15 = arith.constant 0 : index
    %37 = vector.load %arg6[%c0_14, %c0_15] : memref<128x512xbf16, #tpu.memory_space<vmem>>, vector<128x512xbf16>
    %cst_16 = arith.constant dense<0.000000e+00> : vector<8x512xf32>
    %38 = tpu.matmul %36, %37, %cst_16 {dimension_numbers = #tpu.dot_dimension_numbers<[1], [0], [0], [1], [0, 0, 1, 1], [], []>} : vector<8x128xbf16>, vector<128x512xbf16>, vector<8x512xf32> -> vector<8x512xf32>
    %39 = vector.extract_strided_slice %38 {offsets = [0, 0], sizes = [8, 256], strides = [1, 1]} : vector<8x512xf32> to vector<8x256xf32>
    %40 = vector.extract_strided_slice %38 {offsets = [0, 256], sizes = [8, 256], strides = [1, 1]} : vector<8x512xf32> to vector<8x256xf32>
    %41 = arith.truncf %39 : vector<8x256xf32> to vector<8x256xbf16>
    %42 = arith.negf %41 : vector<8x256xbf16>
    %43 = math.exp %42 : vector<8x256xbf16>
    %cst_17 = arith.constant 1.000000e+00 : bf16
    %44 = vector.broadcast %cst_17 : bf16 to vector<8x256xbf16>
    %45 = arith.addf %44, %43 : vector<8x256xbf16>
    %46 = arith.divf %44, %45 : vector<8x256xbf16>
    %47 = arith.mulf %41, %46 : vector<8x256xbf16>
    %48 = arith.truncf %40 : vector<8x256xf32> to vector<8x256xbf16>
    %49 = arith.mulf %47, %48 : vector<8x256xbf16>
    %c0_18 = arith.constant 0 : index
    %c0_19 = arith.constant 0 : index
    %50 = vector.load %arg7[%c0_18, %c0_19] : memref<256x128xbf16, #tpu.memory_space<vmem>>, vector<256x128xbf16>
    %cst_20 = arith.constant dense<0.000000e+00> : vector<8x128xf32>
    %51 = tpu.matmul %49, %50, %cst_20 {dimension_numbers = #tpu.dot_dimension_numbers<[1], [0], [0], [1], [0, 0, 1, 1], [], []>} : vector<8x256xbf16>, vector<256x128xbf16>, vector<8x128xf32> -> vector<8x128xf32>
    %52 = arith.addf %51, %35 : vector<8x128xf32>
    %53 = arith.truncf %52 : vector<8x128xf32> to vector<8x128xbf16>
    %c0_21 = arith.constant 0 : index
    %c0_22 = arith.constant 0 : index
    %54 = vector.load %arg8[%c0_21, %c0_22] : memref<8x128xbf16, #tpu.memory_space<vmem>>, vector<8x128xbf16>
    tpu.vector_store %arg8[%c0_21, %c0_22], %53 {strides = array<i32>} : memref<8x128xbf16, #tpu.memory_space<vmem>>, vector<8x128xbf16>,
    return
  }
  func.func @transform_0(%arg0: i32) -> (i32, i32) {
    %c0_i32 = arith.constant 0 : i32
    %c0_i32_0 = arith.constant 0 : i32
    return %arg0, %c0_i32 : i32, i32
  }
  func.func @transform_1(%arg0: i32) -> (i32, i32) {
    %c0_i32 = arith.constant 0 : i32
    %c0_i32_0 = arith.constant 0 : i32
    %c0_i32_1 = arith.constant 0 : i32
    return %c0_i32, %c0_i32_0 : i32, i32
  }
  func.func @transform_2(%arg0: i32) -> (i32, i32) {
    %c0_i32 = arith.constant 0 : i32
    %c0_i32_0 = arith.constant 0 : i32
    %c0_i32_1 = arith.constant 0 : i32
    return %c0_i32, %c0_i32_0 : i32, i32
  }
  func.func @transform_3(%arg0: i32) -> (i32, i32) {
    %c0_i32 = arith.constant 0 : i32
    %c0_i32_0 = arith.constant 0 : i32
    %c0_i32_1 = arith.constant 0 : i32
    return %c0_i32, %c0_i32_0 : i32, i32
  }
  func.func @transform_4(%arg0: i32) -> (i32, i32) {
    %c0_i32 = arith.constant 0 : i32
    %c0_i32_0 = arith.constant 0 : i32
    %c0_i32_1 = arith.constant 0 : i32
    return %c0_i32, %c0_i32_0 : i32, i32
  }
  func.func @transform_5(%arg0: i32) -> (i32, i32) {
    %c0_i32 = arith.constant 0 : i32
    %c0_i32_0 = arith.constant 0 : i32
    %c0_i32_1 = arith.constant 0 : i32
    return %c0_i32, %c0_i32_0 : i32, i32
  }
  func.func @transform_6(%arg0: i32) -> (i32, i32) {
    %c0_i32 = arith.constant 0 : i32
    %c0_i32_0 = arith.constant 0 : i32
    %c0_i32_1 = arith.constant 0 : i32
    return %c0_i32, %c0_i32_0 : i32, i32
  }
  func.func @transform_7(%arg0: i32) -> (i32, i32) {
    %c0_i32 = arith.constant 0 : i32
    %c0_i32_0 = arith.constant 0 : i32
    return %arg0, %c0_i32 : i32, i32
  }
}

</mosaic_0001>

<bundles_post_ra>
// kernel: tpu_custom_call.1
= control target key start
LH: loop header
LB: loop body
LE: loop exit
PB: predicated region body
PF: predicated region fallthrough
CT: control target
= control target key end

     0   :  { %12 = vsyncpa [#allocation3], 0  ;;  %s2251_s0 = inlined_call_operand.hbm [shape: bf16[8,128], index: 0, kind: input, shape index: {}]   ;;  %s2252_s1 = inlined_call_operand.hbm [shape: bf16[128,512], index: 1, kind: input, shape index: {}]   ;;  %s2253_s2 = inlined_call_operand.hbm [shape: bf16[256,128], index: 2, kind: input, shape index: {}]   ;;  %s2254_s3 = inlined_call_operand.hbm [shape: bf16[128,512], index: 3, kind: input, shape index: {}]   ;;  %s2255_s4 = inlined_call_operand.hbm [shape: bf16[256,128], index: 4, kind: input, shape index: {}]   ;;  %s2256_s5 = inlined_call_operand.hbm [shape: bf16[128,512], index: 5, kind: input, shape index: {}]   ;;  %s2257_s6 = inlined_call_operand.hbm [shape: bf16[256,128], index: 6, kind: input, shape index: {}]   ;;  %s2258_s7 = inlined_call_operand.hbm [shape: bf16[8,128], index: 7, kind: output, shape index: {}]  }
   0x1   :  { %13 = vsyncpa [#allocation6], 0 }
   0x2   :  { %14 = vsyncpa [#allocation9], 0 }
   0x3   :  { %15 = vsyncpa [#allocation12], 0 }
   0x4   :  { %16 = vsyncpa [#allocation4], 0  ;;  %s2153_s24 = smov [#allocation5]  }
   0x5   :  { %s32_s25 = sshll.u32 %s2153_s24, 4  ;;  %s33_s25 = int_to_ptr.vmem [resolvable:$true] %s32_s25 }
   0x6   :  { %s1991_s26 = scalar_lea.vmem %s33_s25, 4096  ;;  %p1996_p1 = scmp.lt.s32.totalorder %s33_s25, %s33_s25 }
   0x7   :  { %p1992_p0 = scmp.ne.s32.totalorder %s33_s25, %s1991_s26  ;;  %p1997_p2 = scmp.lt.s32.totalorder %s1991_s26, %s1991_s26 }
   0x9   :  { %p1998_p3 = por %p1997_p2, %p1996_p1 }
   0xb   :  { %p1999_p4 = pnand %p1998_p3, %p1992_p0 }
   0xd   :  { %2002 = shalt.err (!%p1999_p4)
}
   0xe   :  { %s2154_s27 = smov 256   ;;  %s2155_s28 = smov 16  }
   0xf   :  { %38 = dma.hbm_to_vmem [thread:$0]  %s2252_s1, 4096, %s33_s25, [#allocation6], %s2154_s27, %s2154_s27, %s2155_s28  }
  0x10   :  { %s2156_s8 = smov [#allocation8]   ;;  %s2157_s10 = smov [#allocation11]  }
  0x11   :  { %s56_s9 = sshll.u32 %s2156_s8, 4  ;;  %s80_s11 = sshll.u32 %s2157_s10, 4  ;;  %s57_s9 = int_to_ptr.vmem [resolvable:$true] %s56_s9  ;;  %s81_s11 = int_to_ptr.vmem [resolvable:$true] %s80_s11 }
  0x12   :  { %s2011_s12 = scalar_lea.vmem %s57_s9, 4096  ;;  %p2016_p6 = scmp.lt.s32.totalorder %s57_s9, %s57_s9 }
  0x13   :  { %p2012_p5 = scmp.ne.s32.totalorder %s57_s9, %s2011_s12  ;;  %p2017_p7 = scmp.lt.s32.totalorder %s2011_s12, %s2011_s12 }
  0x15   :  { %p2018_p8 = por %p2017_p7, %p2016_p6 }
  0x17   :  { %p2019_p9 = pnand %p2018_p8, %p2012_p5 }
  0x19   :  { %2022 = shalt.err (!%p2019_p9)
}
  0x1a   :  { %62 = dma.hbm_to_vmem [thread:$0]  %s2254_s3, 4096, %s57_s9, [#allocation9], %s2154_s27, %s2154_s27, %s2155_s28  }
  0x1b   :  { %s2031_s15 = scalar_lea.vmem %s81_s11, 4096  ;;  %p2036_p11 = scmp.lt.s32.totalorder %s81_s11, %s81_s11 }
  0x1c   :  { %p2032_p10 = scmp.ne.s32.totalorder %s81_s11, %s2031_s15  ;;  %p2037_p12 = scmp.lt.s32.totalorder %s2031_s15, %s2031_s15 }
  0x1e   :  { %p2038_p13 = por %p2037_p12, %p2036_p11 }
  0x20   :  { %p2039_p0 = pnand %p2038_p13, %p2032_p10 }
  0x22   :  { %2042 = shalt.err (!%p2039_p0)
}
  0x23   :  { %86 = dma.hbm_to_vmem [thread:$0]  %s2256_s5, 4096, %s81_s11, [#allocation12], %s2154_s27, %s2154_s27, %s2155_s28  }
  0x24   :  { %s2158_s17 = smov [#allocation2]   ;;  %s2159_s19 = smov [#allocation7]  }
  0x25   :  { %s23_s18 = sshll.u32 %s2158_s17, 4  ;;  %s44_s20 = sshll.u32 %s2159_s19, 4  ;;  %s24_s18 = int_to_ptr.vmem [resolvable:$true] %s23_s18  ;;  %s45_s20 = int_to_ptr.vmem [resolvable:$true] %s44_s20 }
  0x26   :  { %s2051_s21 = scalar_lea.vmem %s24_s18, 64  ;;  %p2056_p2 = scmp.lt.s32.totalorder %s24_s18, %s24_s18 }
  0x27   :  { %p2052_p1 = scmp.ne.s32.totalorder %s24_s18, %s2051_s21  ;;  %p2057_p3 = scmp.lt.s32.totalorder %s2051_s21, %s2051_s21 }
  0x29   :  { %p2058_p4 = por %p2057_p3, %p2056_p2 }
  0x2b   :  { %p2059_p5 = pnand %p2058_p4, %p2052_p1 }
  0x2d   :  { %2062 = shalt.err (!%p2059_p5)
}
  0x2e   :  { %26 = dma.hbm_to_vmem [thread:$0]  %s2251_s0, 64, %s24_s18, [#allocation3]  }
  0x2f   :  { %s2071_s23 = scalar_lea.vmem %s45_s20, 2048  ;;  %p2076_p7 = scmp.lt.s32.totalorder %s45_s20, %s45_s20 }
  0x30   :  { %p2072_p6 = scmp.ne.s32.totalorder %s45_s20, %s2071_s23  ;;  %p2077_p8 = scmp.lt.s32.totalorder %s2071_s23, %s2071_s23 }
  0x32   :  { %p2078_p9 = por %p2077_p8, %p2076_p7 }
  0x34   :  { %p2079_p10 = pnand %p2078_p9, %p2072_p6 }
  0x36   :  { %2082 = shalt.err (!%p2079_p10)
}
  0x37   :  { %s2160_s5 = smov 64   ;;  %s2161_s24 = smov 4  }
  0x38   :  { %50 = dma.hbm_to_vmem [thread:$0]  %s2253_s2, 2048, %s45_s20, [#allocation6], %s2160_s5, %s2160_s5, %s2161_s24  }
  0x39   :  { %s2162_s27 = smov [#allocation10]   ;;  %s2163_s29 = smov [#allocation13]  }
  0x3a   :  { %s68_s28 = sshll.u32 %s2162_s27, 4  ;;  %s92_s30 = sshll.u32 %s2163_s29, 4  ;;  %s69_s28 = int_to_ptr.vmem [resolvable:$true] %s68_s28  ;;  %s93_s30 = int_to_ptr.vmem [resolvable:$true] %s92_s30 }
  0x3b   :  { %s2091_s0 = scalar_lea.vmem %s69_s28, 2048  ;;  %p2096_p12 = scmp.lt.s32.totalorder %s69_s28, %s69_s28 }
  0x3c   :  { %p2092_p11 = scmp.ne.s32.totalorder %s69_s28, %s2091_s0  ;;  %p2097_p13 = scmp.lt.s32.totalorder %s2091_s0, %s2091_s0 }
  0x3e   :  { %p2098_p0 = por %p2097_p13, %p2096_p12 }
  0x40   :  { %p2099_p1 = pnand %p2098_p0, %p2092_p11 }
  0x42   :  { %2102 = shalt.err (!%p2099_p1)
}
  0x43   :  { %74 = dma.hbm_to_vmem [thread:$0]  %s2255_s4, 2048, %s69_s28, [#allocation9], %s2160_s5, %s2160_s5, %s2161_s24  }
  0x44   :  { %s2111_s10 = scalar_lea.vmem %s93_s30, 2048  ;;  %p2116_p3 = scmp.lt.s32.totalorder %s93_s30, %s93_s30 }
  0x45   :  { %p2112_p2 = scmp.ne.s32.totalorder %s93_s30, %s2111_s10  ;;  %p2117_p4 = scmp.lt.s32.totalorder %s2111_s10, %s2111_s10 }
  0x47   :  { %p2118_p5 = por %p2117_p4, %p2116_p3 }
  0x49   :  { %p2119_p6 = pnand %p2118_p5, %p2112_p2 }
  0x4b   :  { %2122 = shalt.err (!%p2119_p6)
}
  0x4c   :  { %98 = dma.hbm_to_vmem [thread:$0]  %s2257_s6, 2048, %s93_s30, [#allocation12], %s2160_s5, %s2160_s5, %s2161_s24  }
  0x4d   :  { %2143 = dma.done.wait [#allocation3], 64  }
  0x4e   :  { %2144 = vsyncadd [#allocation3], 4294967232 }
  0x4f   :  { %2145 = dma.done.wait [#allocation6], 6144  }
  0x50   :  { %2146 = vsyncadd [#allocation6], 4294961152 }
  0x51   :  { %2147 = dma.done.wait [#allocation9], 6144  }
  0x52   :  { %2148 = vsyncadd [#allocation9], 4294961152 }
  0x53   :  { %2149 = dma.done.wait [#allocation12], 6144  }
  0x54   :  { %2150 = vsyncadd [#allocation12], 4294961152  ;;  %v2164_v0 = vmov 0   ;;  %v1767_v1 = vld [vmem:[#allocation5 + $0xe4] ss:$16 sps:$4 sm:$0xff]   ;;  %v1815_v34 = vld [vmem:[#allocation7 + $0x78] sm:$0xff]  }
  0x55   :  { %348 = vmatprep.mubr.bf16.mxu0 %v2164_v0  ;;  %389 = vmatprep.mubr.bf16.mxu1 %v2164_v0  ;;  %v1769_v2 = vld [vmem:[#allocation5 + $0xe0] ss:$16 sps:$4 sm:$0xff]   ;;  %v1770_v3 = vld [vmem:[#allocation5 + $0xc4] ss:$16 sps:$4 sm:$0xff]   ;;  %v1791_v10 = vld [vmem:[#allocation5 + $0xec] ss:$16 sps:$4 sm:$0xff]  }
  0x56   :  { %316 = vmatprep.subr.bf16.mxu0 %v1767_v1  ;;  %v1772_v4 = vld [vmem:[#allocation5 + $0xc0] ss:$16 sps:$4 sm:$0xff]   ;;  %v1773_v5 = vld [vmem:[#allocation5 + $0xa4] ss:$16 sps:$4 sm:$0xff]   ;;  %v1793_v11 = vld [vmem:[#allocation5 + $0xe8] ss:$16 sps:$4 sm:$0xff]   ;;  %357 = vmatprep.subr.bf16.mxu1 %v1791_v10 }
  0x57   :  { %317 = vmatpush1.bf16.msra.mxu0 %v1769_v2  ;;  %v1775_v6 = vld [vmem:[#allocation5 + $0xa0] ss:$16 sps:$4 sm:$0xff]   ;;  %v1776_v7 = vld [vmem:[#allocation5 + $0x84] ss:$16 sps:$4 sm:$0xff]   ;;  %v1794_v12 = vld [vmem:[#allocation5 + $0xcc] ss:$16 sps:$4 sm:$0xff]   ;;  %358 = vmatpush1.bf16.msra.mxu1 %v1793_v11 }
  0x58   :  { %318 = vmatprep.subr.bf16.mxu0 %v1770_v3  ;;  %v1778_v8 = vld [vmem:[#allocation5 + $0x80] ss:$16 sps:$4 sm:$0xff]   ;;  %v1779_v9 = vld [vmem:[#allocation5 + $0x64] ss:$16 sps:$4 sm:$0xff]   ;;  %v1796_v14 = vld [vmem:[#allocation5 + $0xc8] ss:$16 sps:$4 sm:$0xff]   ;;  %359 = vmatprep.subr.bf16.mxu1 %v1794_v12 }
  0x59   :  { %v1781_v13 = vld [vmem:[#allocation5 + $0x60] ss:$16 sps:$4 sm:$0xff]   ;;  %v1797_v15 = vld [vmem:[#allocation5 + $0xac] ss:$16 sps:$4 sm:$0xff]   ;;  %v1782_v16 = vld [vmem:[#allocation5 + $0x44] ss:$16 sps:$4 sm:$0xff]  }
  0x5a   :  { %v1784_v17 = vld [vmem:[#allocation5 + $0x40] ss:$16 sps:$4 sm:$0xff]   ;;  %v1799_v18 = vld [vmem:[#allocation5 + $0xa8] ss:$16 sps:$4 sm:$0xff]   ;;  %v1800_v19 = vld [vmem:[#allocation5 + $0x8c] ss:$16 sps:$4 sm:$0xff]  }
  0x5b   :  { %319 = vmatpush1.bf16.msra.mxu0 %v1772_v4  ;;  %360 = vmatpush1.bf16.msra.mxu1 %v1796_v14  ;;  %v1785_v20 = vld [vmem:[#allocation5 + $0x24] ss:$16 sps:$4 sm:$0xff]   ;;  %v1787_v21 = vld [vmem:[#allocation5 + $0x20] ss:$16 sps:$4 sm:$0xff]   ;;  %v1802_v22 = vld [vmem:[#allocation5 + $0x88] ss:$16 sps:$4 sm:$0xff]  }
  0x5c   :  { %320 = vmatprep.subr.bf16.mxu0 %v1773_v5  ;;  %361 = vmatprep.subr.bf16.mxu1 %v1797_v15  ;;  %v1803_v23 = vld [vmem:[#allocation5 + $0x6c] ss:$16 sps:$4 sm:$0xff]   ;;  %v1788_v24 = vld [vmem:[#allocation5 + $0x4] ss:$16 sps:$4 sm:$0xff]   ;;  %v1805_v25 = vld [vmem:[#allocation5 + $0x68] ss:$16 sps:$4 sm:$0xff]  }
  0x5d   :  { %v1790_v26 = vld [vmem:[#allocation5] ss:$16 sps:$4 sm:$0xff]   ;;  %v1806_v27 = vld [vmem:[#allocation5 + $0x4c] ss:$16 sps:$4 sm:$0xff]   ;;  %v1808_v28 = vld [vmem:[#allocation5 + $0x48] ss:$16 sps:$4 sm:$0xff]  }
  0x5e   :  { %v2229_v29 = vld [vmem:[#allocation2] sm:$0xf]  ;;  %v1811_v31 = vld [vmem:[#allocation5 + $0x28] ss:$16 sps:$4 sm:$0xff]   ;;  %v1817_v36 = vld [vmem:[#allocation7 + $0x70] sm:$0xff]   ;;  %s2165_s4 = smov [#allocation14]  }
  0x5f   :  { %321 = vmatpush1.bf16.msra.mxu0 %v1775_v6  ;;  %362 = vmatpush1.bf16.msra.mxu1 %v1799_v18  ;;  %v1809_v30 = vld [vmem:[#allocation5 + $0x2c] ss:$16 sps:$4 sm:$0xff]   ;;  %v1814_v33 = vld [vmem:[#allocation5 + $0x8] ss:$16 sps:$4 sm:$0xff]   ;;  %v1818_v37 = vld [vmem:[#allocation7 + $0x30] sm:$0xff]   ;;  %s1526_s6 = sshll.u32 %s2165_s4, 4  ;;  %s1527_s6 = int_to_ptr.vmem [resolvable:$true] %s1526_s6 }
  0x60   :  { %322 = vmatprep.subr.bf16.mxu0 %v1776_v7  ;;  %363 = vmatprep.subr.bf16.mxu1 %v1800_v19  ;;  %v1812_v32 = vld [vmem:[#allocation5 + $0xc] ss:$16 sps:$4 sm:$0xff]   ;;  %v1821_v40 = vld [vmem:[#allocation7 + $0x60] sm:$0xff]   ;;  %v1825_v44 = vld [vmem:[#allocation7 + $0x50] sm:$0xff]   ;;  %s2123_s12 = scalar_lea.vmem %s1527_s6, 64  ;;  %p2128_p8 = scmp.lt.s32.totalorder %s1527_s6, %s1527_s6 }
  0x61   :  { %v1816_v35 = vld [vmem:[#allocation7 + $0x38] sm:$0xff]   ;;  %v1819_v38 = vld [vmem:[#allocation7 + $0x68] sm:$0xff]   ;;  %v1822_v41 = vld [vmem:[#allocation7 + $0x20] sm:$0xff]   ;;  %p2124_p7 = scmp.ne.s32.totalorder %s1527_s6, %s2123_s12  ;;  %p2129_p9 = scmp.lt.s32.totalorder %s2123_s12, %s2123_s12 }
  0x62   :  { %v1820_v39 = vld [vmem:[#allocation7 + $0x28] sm:$0xff]   ;;  %v1823_v42 = vld [vmem:[#allocation7 + $0x58] sm:$0xff]   ;;  %v1826_v45 = vld [vmem:[#allocation7 + $0x10] sm:$0xff]  }
  0x63   :  { %323 = vmatpush1.bf16.msra.mxu0 %v1778_v8  ;;  %364 = vmatpush1.bf16.msra.mxu1 %v1802_v22  ;;  %v1824_v43 = vld [vmem:[#allocation7 + $0x18] sm:$0xff]   ;;  %v1827_v46 = vld [vmem:[#allocation7 + $0x48] sm:$0xff]   ;;  %v1829_v48 = vld [vmem:[#allocation7 + $0x40] sm:$0xff]   ;;  %p2130_p10 = por %p2129_p9, %p2128_p8 }
  0x64   :  { %324 = vmatprep.subr.bf16.mxu0 %v1779_v9  ;;  %365 = vmatprep.subr.bf16.mxu1 %v1803_v23  ;;  %v1828_v47 = vld [vmem:[#allocation7 + $0x8] sm:$0xff]   ;;  %v1830_v49 = vld [vmem:[#allocation7] sm:$0xff]  }
  0x65   :  { %v1831_v50 = vld [vmem:[#allocation8 + $0xe0] ss:$16 sps:$4 sm:$0xff]   ;;  %v1833_v51 = vld [vmem:[#allocation8 + $0xe4] ss:$16 sps:$4 sm:$0xff]   ;;  %v1836_v52 = vld [vmem:[#allocation8 + $0xec] ss:$16 sps:$4 sm:$0xff]   ;;  %p2131_p11 = pnand %p2130_p10, %p2124_p7 }
  0x66   :  { %v1839_v53 = vld [vmem:[#allocation8 + $0xc4] ss:$16 sps:$4 sm:$0xff]   ;;  %v1837_v54 = vld [vmem:[#allocation8 + $0xc0] ss:$16 sps:$4 sm:$0xff]  }
  0x67   :  { %325 = vmatpush1.bf16.msra.mxu0 %v1781_v13  ;;  %366 = vmatpush1.bf16.msra.mxu1 %v1805_v25  ;;  %v1845_v55 = vld [vmem:[#allocation8 + $0xa4] ss:$16 sps:$4 sm:$0xff]   ;;  %v1843_v56 = vld [vmem:[#allocation8 + $0xa0] ss:$16 sps:$4 sm:$0xff]   ;;  %v1834_v25 = vld [vmem:[#allocation8 + $0xe8] ss:$16 sps:$4 sm:$0xff]  }
  0x68   :  { %326 = vmatprep.subr.bf16.mxu0 %v1782_v16  ;;  %367 = vmatprep.subr.bf16.mxu1 %v1806_v27  ;;  %v1851_v57 = vld [vmem:[#allocation8 + $0x84] ss:$16 sps:$4 sm:$0xff]   ;;  %v1849_v58 = vld [vmem:[#allocation8 + $0x80] ss:$16 sps:$4 sm:$0xff]   ;;  %v1842_v27 = vld [vmem:[#allocation8 + $0xcc] ss:$16 sps:$4 sm:$0xff]  }
  0x69   :  { %v1857_v59 = vld [vmem:[#allocation8 + $0x64] ss:$16 sps:$4 sm:$0xff]   ;;  %v1855_v60 = vld [vmem:[#allocation8 + $0x60] ss:$16 sps:$4 sm:$0xff]  }
  0x6a   :  { %v1863_v61 = vld [vmem:[#allocation8 + $0x44] ss:$16 sps:$4 sm:$0xff]   ;;  %v1861_v62 = vld [vmem:[#allocation8 + $0x40] ss:$16 sps:$4 sm:$0xff]  }
  0x6b   :  { %327 = vmatpush1.bf16.msra.mxu0 %v1784_v17  ;;  %368 = vmatpush1.bf16.msra.mxu1 %v1808_v28  ;;  %v1840_v28 = vld [vmem:[#allocation8 + $0xc8] ss:$16 sps:$4 sm:$0xff]  }
  0x6c   :  { %328 = vmatprep.subr.bf16.mxu0 %v1785_v20  ;;  %369 = vmatprep.subr.bf16.mxu1 %v1809_v30  ;;  %v1848_v30 = vld [vmem:[#allocation8 + $0xac] ss:$16 sps:$4 sm:$0xff]  }
  0x6f   :  { %329 = vmatpush1.bf16.msra.mxu0 %v1787_v21  ;;  %370 = vmatpush1.bf16.msra.mxu1 %v1811_v31  ;;  %v1846_v31 = vld [vmem:[#allocation8 + $0xa8] ss:$16 sps:$4 sm:$0xff]  }
  0x70   :  { %330 = vmatprep.subr.bf16.mxu0 %v1788_v24  ;;  %371 = vmatprep.subr.bf16.mxu1 %v1812_v32  ;;  %v1854_v32 = vld [vmem:[#allocation8 + $0x8c] ss:$16 sps:$4 sm:$0xff]  }
  0x73   :  { %331 = vmatpush1.bf16.msra.mxu0 %v1790_v26  ;;  %372 = vmatpush1.bf16.msra.mxu1 %v1814_v33  ;;  %v1852_v33 = vld [vmem:[#allocation8 + $0x88] ss:$16 sps:$4 sm:$0xff]  }
  0x74   :  { %1688 = vmatprep.subr.bf16.mxu0 %v1815_v34  ;;  %781 = vmatprep.subr.bf16.mxu1 %v1833_v51  ;;  %v1860_v34 = vld [vmem:[#allocation8 + $0x6c] ss:$16 sps:$4 sm:$0xff]  }
  0x76   :  { %349 = vmatmul.mubr.bf16.vlgmr.msra.gmra.mxu0 %v2229_v29  ;;  %390 = vmatmul.mubr.bf16.vlgmr.msra.gmra.mxu1 %v2229_v29 }
  0x77   :  { %813 = vmatprep.mubr.bf16.mxu1 %v2164_v0  ;;  %1689 = vmatpush3.bf16.msra.mxu0 %v1816_v35  ;;  %v1858_v35 = vld [vmem:[#allocation8 + $0x68] ss:$16 sps:$4 sm:$0xff]  }
  0x78   :  { %1690 = vmatprep.subr.bf16.mxu0 %v1817_v36  ;;  %782 = vmatpush1.bf16.msra.mxu1 %v1831_v50  ;;  %v1866_v36 = vld [vmem:[#allocation8 + $0x4c] ss:$16 sps:$4 sm:$0xff]  }
  0x79   :  { %783 = vmatprep.subr.bf16.mxu1 %v1839_v53 }
  0x7b   :  { %1691 = vmatpush3.bf16.msra.mxu0 %v1818_v37  ;;  %v1864_v37 = vld [vmem:[#allocation8 + $0x48] ss:$16 sps:$4 sm:$0xff]  }
  0x7c   :  { %1692 = vmatprep.subr.bf16.mxu0 %v1819_v38  ;;  %784 = vmatpush1.bf16.msra.mxu1 %v1837_v54  ;;  %v1869_v38 = vld [vmem:[#allocation8 + $0x24] ss:$16 sps:$4 sm:$0xff]   ;;  %v1879_v54 = vld [vmem:[#allocation10 + $0x78] sm:$0xff]  }
  0x7d   :  { %785 = vmatprep.subr.bf16.mxu1 %v1845_v55  ;;  %v1880_v55 = vld [vmem:[#allocation10 + $0x38] sm:$0xff]  }
  0x7f   :  { %1693 = vmatpush3.bf16.msra.mxu0 %v1820_v39  ;;  %v1872_v39 = vld [vmem:[#allocation8 + $0x2c] ss:$16 sps:$4 sm:$0xff]  }
  0x80   :  { %1694 = vmatprep.subr.bf16.mxu0 %v1821_v40  ;;  %786 = vmatpush1.bf16.msra.mxu1 %v1843_v56  ;;  %v1867_v40 = vld [vmem:[#allocation8 + $0x20] ss:$16 sps:$4 sm:$0xff]  }
  0x81   :  { %787 = vmatprep.subr.bf16.mxu1 %v1851_v57  ;;  %v1881_v56 = vld [vmem:[#allocation10 + $0x70] sm:$0xff]  }
  0x82   :  { %v1882_v57 = vld [vmem:[#allocation10 + $0x30] sm:$0xff]  }
  0x83   :  { %1695 = vmatpush3.bf16.msra.mxu0 %v1822_v41  ;;  %v1870_v41 = vld [vmem:[#allocation8 + $0x28] ss:$16 sps:$4 sm:$0xff]  }
  0x84   :  { %1696 = vmatprep.subr.bf16.mxu0 %v1823_v42  ;;  %788 = vmatpush1.bf16.msra.mxu1 %v1849_v58  ;;  %v1875_v42 = vld [vmem:[#allocation8 + $0x4] ss:$16 sps:$4 sm:$0xff]   ;;  %v1884_v58 = vld [vmem:[#allocation10 + $0x28] sm:$0xff]  }
  0x85   :  { %789 = vmatprep.subr.bf16.mxu1 %v1857_v59  ;;  %v1885_v59 = vld [vmem:[#allocation10 + $0x60] sm:$0xff]  }
  0x87   :  { %1697 = vmatpush3.bf16.msra.mxu0 %v1824_v43  ;;  %v1878_v43 = vld [vmem:[#allocation8 + $0xc] ss:$16 sps:$4 sm:$0xff]  }
  0x88   :  { %1698 = vmatprep.subr.bf16.mxu0 %v1825_v44  ;;  %790 = vmatpush1.bf16.msra.mxu1 %v1855_v60  ;;  %v1873_v44 = vld [vmem:[#allocation8] ss:$16 sps:$4 sm:$0xff]  }
  0x89   :  { %791 = vmatprep.subr.bf16.mxu1 %v1863_v61  ;;  %v1886_v60 = vld [vmem:[#allocation10 + $0x20] sm:$0xff]   ;;  %v1887_v61 = vld [vmem:[#allocation10 + $0x58] sm:$0xff]  }
  0x8b   :  { %1699 = vmatpush3.bf16.msra.mxu0 %v1826_v45  ;;  %v1876_v45 = vld [vmem:[#allocation8 + $0x8] ss:$16 sps:$4 sm:$0xff]  }
  0x8c   :  { %1700 = vmatprep.subr.bf16.mxu0 %v1827_v46  ;;  %792 = vmatpush1.bf16.msra.mxu1 %v1861_v62  ;;  %v1888_v62 = vld [vmem:[#allocation10 + $0x18] sm:$0xff]  }
  0x8d   :  { %793 = vmatprep.subr.bf16.mxu1 %v1869_v38 }
  0x8f   :  { %1701 = vmatpush3.bf16.msra.mxu0 %v1828_v47  ;;  %v123_v47 = vunpack.c.l.bf16 %v2229_v29  ;;  %v1883_v29 = vld [vmem:[#allocation10 + $0x68] sm:$0xff]  }
  0x90   :  { %1702 = vmatprep.subr.bf16.mxu0 %v1829_v48  ;;  %794 = vmatpush1.bf16.msra.mxu1 %v1867_v40 }
  0x91   :  { %795 = vmatprep.subr.bf16.mxu1 %v1875_v42 }
  0x93   :  { %1703 = vmatpush3.bf16.msra.mxu0 %v1830_v49 }
  0x94   :  { %822 = vmatprep.subr.bf16.mxu0 %v1836_v52  ;;  %796 = vmatpush1.bf16.msra.mxu1 %v1873_v44 }
  0x95   :  { %1710 = vmatprep.subr.bf16.mxu1 %v1879_v54  ;;  %v1924_v54 = vld [vmem:[#allocation11 + $0x6c] ss:$16 sps:$4 sm:$0xff]  }
 0x136   :  { %v350_v63 = vpop.f32.mrf.mxu0  ;;  %v391_v8 = vpop.f32.mrf.mxu1 }
 0x137   :  { %v398_v1 = vpack.c.bf16 %v350_v63, %v350_v63  ;;  %v416_v21 = vpack.c.bf16 %v391_v8, %v391_v8  ;;  %v1889_v63 = vld [vmem:[#allocation10 + $0x50] sm:$0xff]   ;;  %v1900_v8 = vld [vmem:[#allocation11 + $0xec] ss:$16 sps:$4 sm:$0xff]  }
 0x138   :  { %v352_v2 = vpop.f32.mrf.mxu0  ;;  %v393_v9 = vpop.f32.mrf.mxu1 }
 0x139   :  { %v1570_v3 = vmul.bf16 3216621497, %v398_v1  ;;  %v399_v4 = vpack.c.bf16 %v352_v2, %v352_v2  ;;  %v417_v23 = vpack.c.bf16 %v393_v9, %v393_v9  ;;  %v1891_v2 = vld [vmem:[#allocation10 + $0x48] sm:$0xff]   ;;  %v1903_v9 = vld [vmem:[#allocation11 + $0xc4] ss:$16 sps:$4 sm:$0xff]  }
 0x13a   :  { %v354_v5 = vpop.f32.mrf.mxu0  ;;  %v395_v10 = vpop.f32.mrf.mxu1 }
 0x13b   :  { %1959 = vpow.bf16 %v1570_v3  ;;  %v1571_v6 = vmul.bf16 3216621497, %v399_v4  ;;  %v1892_v3 = vld [vmem:[#allocation10 + $0x8] sm:$0xff]   ;;  %v1894_v5 = vld [vmem:[#allocation10] sm:$0xff]  }
 0x13c   :  { %v355_v7 = vpop.f32.mrf.mxu0  ;;  %v396_v11 = vpop.f32.mrf.mxu1  ;;  %v1901_v10 = vld [vmem:[#allocation11 + $0xc0] ss:$16 sps:$4 sm:$0xff]  }
 0x13d   :  { %1961 = vpow.bf16 %v1571_v6  ;;  %v1895_v6 = vld [vmem:[#allocation11 + $0xe0] ss:$16 sps:$4 sm:$0xff]   ;;  %v1897_v7 = vld [vmem:[#allocation11 + $0xe4] ss:$16 sps:$4 sm:$0xff]  }
 0x13e   :  { %v1909_v11 = vld [vmem:[#allocation11 + $0xa4] ss:$16 sps:$4 sm:$0xff]  }
 0x149   :  { %v1960_v12 = vpop.eup %1959 }
 0x14a   :  { %v408_v13 = vadd.bf16 1065369472, %v1960_v12  ;;  %v1907_v12 = vld [vmem:[#allocation11 + $0xa0] ss:$16 sps:$4 sm:$0xff]  }
 0x14b   :  { %v1962_v14 = vpop.eup %1961 }
 0x14c   :  { %1963 = vrcp.bf16 %v408_v13  ;;  %v409_v15 = vadd.bf16 1065369472, %v1962_v14  ;;  %v1915_v13 = vld [vmem:[#allocation11 + $0x84] ss:$16 sps:$4 sm:$0xff]   ;;  %v1913_v14 = vld [vmem:[#allocation11 + $0x80] ss:$16 sps:$4 sm:$0xff]  }
 0x14e   :  { %1965 = vrcp.bf16 %v409_v15  ;;  %v1921_v15 = vld [vmem:[#allocation11 + $0x64] ss:$16 sps:$4 sm:$0xff]  }
 0x15a   :  { %v1964_v16 = vpop.eup %1963 }
 0x15b   :  { %v411_v17 = vmul.bf16 1065369472, %v1964_v16  ;;  %v1919_v16 = vld [vmem:[#allocation11 + $0x60] ss:$16 sps:$4 sm:$0xff]  }
 0x15c   :  { %v1966_v18 = vpop.eup %1965 }
 0x15d   :  { %v413_v19 = vmul.bf16 1065369472, %v1966_v18  ;;  %v414_v20 = vmul.bf16 %v411_v17, %v398_v1  ;;  %v1890_v1 = vld [vmem:[#allocation10 + $0x10] sm:$0xff]  }
 0x15e   :  { %v1927_v17 = vld [vmem:[#allocation11 + $0x44] ss:$16 sps:$4 sm:$0xff]   ;;  %v1925_v18 = vld [vmem:[#allocation11 + $0x40] ss:$16 sps:$4 sm:$0xff]  }
 0x15f   :  { %v415_v22 = vmul.bf16 %v413_v19, %v399_v4  ;;  %v418_v26 = vmul.bf16 %v416_v21, %v414_v20  ;;  %v1893_v4 = vld [vmem:[#allocation10 + $0x40] sm:$0xff]  }
 0x161   :  { %v419_v24 = vmul.bf16 %v417_v23, %v415_v22 }
 0x163   :  { %580 = vmatprep.mubr.bf16.mxu0 %v419_v24 }
 0x164   :  { %581 = vmatmul.mubr.bf16.vlgmr.msra.gmra.mxu0 %v418_v26 }
 0x165   :  { %823 = vmatpush1.bf16.msra.mxu0 %v1834_v25  ;;  %854 = vmatprep.mubr.bf16.mxu0 %v2164_v0 }
 0x166   :  { %824 = vmatprep.subr.bf16.mxu0 %v1842_v27 }
 0x169   :  { %825 = vmatpush1.bf16.msra.mxu0 %v1840_v28 }
 0x16a   :  { %826 = vmatprep.subr.bf16.mxu0 %v1848_v30 }
 0x16d   :  { %827 = vmatpush1.bf16.msra.mxu0 %v1846_v31 }
 0x16e   :  { %828 = vmatprep.subr.bf16.mxu0 %v1854_v32 }
 0x171   :  { %829 = vmatpush1.bf16.msra.mxu0 %v1852_v33 }
 0x172   :  { %830 = vmatprep.subr.bf16.mxu0 %v1860_v34 }
 0x175   :  { %831 = vmatpush1.bf16.msra.mxu0 %v1858_v35 }
 0x176   :  { %832 = vmatprep.subr.bf16.mxu0 %v1866_v36 }
 0x179   :  { %833 = vmatpush1.bf16.msra.mxu0 %v1864_v37 }
 0x17a   :  { %834 = vmatprep.subr.bf16.mxu0 %v1872_v39 }
 0x17d   :  { %835 = vmatpush1.bf16.msra.mxu0 %v1870_v41 }
 0x17e   :  { %836 = vmatprep.subr.bf16.mxu0 %v1878_v43 }
 0x181   :  { %837 = vmatpush1.bf16.msra.mxu0 %v1876_v45  ;;  %v1898_v45 = vld [vmem:[#allocation11 + $0xe8] ss:$16 sps:$4 sm:$0xff]  }
 0x182   :  { %1246 = vmatprep.subr.bf16.mxu0 %v1897_v7 }
 0x224   :  { %v1704_v46 = vpop.f32.mrf.mxu0 }
 0x226   :  { %v1705_v48 = vpop.f32.mrf.mxu0 }
 0x227   :  { %v1706_v49 = vadd.f32 %v1705_v48, %v1704_v46  ;;  %v1904_v48 = vld [vmem:[#allocation11 + $0xc8] ss:$16 sps:$4 sm:$0xff]  }
 0x228   :  { %v1707_v50 = vpop.f32.mrf.mxu0 }
 0x229   :  { %v2236_v51 = vadd.f32 %v1706_v49, %v123_v47  ;;  %v1906_v47 = vld [vmem:[#allocation11 + $0xcc] ss:$16 sps:$4 sm:$0xff]   ;;  %v1910_v50 = vld [vmem:[#allocation11 + $0xa8] ss:$16 sps:$4 sm:$0xff]  }
 0x22a   :  { %v1708_v52 = vpop.f32.mrf.mxu0  ;;  %v1912_v49 = vld [vmem:[#allocation11 + $0xac] ss:$16 sps:$4 sm:$0xff]  }
 0x22b   :  { %v588_v53 = vpack.c.bf16 %v2236_v51, %v2236_v51  ;;  %v1918_v52 = vld [vmem:[#allocation11 + $0x8c] ss:$16 sps:$4 sm:$0xff]  }
 0x22d   :  { %814 = vmatmul.mubr.bf16.vlgmr.msra.gmra.mxu1 %v588_v53  ;;  %855 = vmatmul.mubr.bf16.vlgmr.msra.gmra.mxu0 %v588_v53  ;;  %v1916_v53 = vld [vmem:[#allocation11 + $0x88] ss:$16 sps:$4 sm:$0xff]  }
 0x22e   :  { %1278 = vmatprep.mubr.bf16.mxu0 %v2164_v0  ;;  %1711 = vmatpush3.bf16.msra.mxu1 %v1880_v55  ;;  %v1922_v55 = vld [vmem:[#allocation11 + $0x68] ss:$16 sps:$4 sm:$0xff]  }
 0x22f   :  { %1712 = vmatprep.subr.bf16.mxu1 %v1881_v56  ;;  %1247 = vmatpush1.bf16.msra.mxu0 %v1895_v6  ;;  %v1930_v56 = vld [vmem:[#allocation11 + $0x4c] ss:$16 sps:$4 sm:$0xff]  }
 0x230   :  { %1248 = vmatprep.subr.bf16.mxu0 %v1903_v9  ;;  %v1944_v9 = vld [vmem:[#allocation13 + $0x38] sm:$0xff]  }
 0x232   :  { %1713 = vmatpush3.bf16.msra.mxu1 %v1882_v57  ;;  %v1928_v57 = vld [vmem:[#allocation11 + $0x48] ss:$16 sps:$4 sm:$0xff]  }
 0x233   :  { %1714 = vmatprep.subr.bf16.mxu1 %v1883_v29  ;;  %1249 = vmatpush1.bf16.msra.mxu0 %v1901_v10  ;;  %v1933_v29 = vld [vmem:[#allocation11 + $0x24] ss:$16 sps:$4 sm:$0xff]  }
 0x234   :  { %1250 = vmatprep.subr.bf16.mxu0 %v1909_v11  ;;  %v1945_v10 = vld [vmem:[#allocation13 + $0x70] sm:$0xff]  }
 0x235   :  { %v1946_v11 = vld [vmem:[#allocation13 + $0x30] sm:$0xff]  }
 0x236   :  { %1715 = vmatpush3.bf16.msra.mxu1 %v1884_v58  ;;  %v1931_v58 = vld [vmem:[#allocation11 + $0x20] ss:$16 sps:$4 sm:$0xff]  }
 0x237   :  { %1716 = vmatprep.subr.bf16.mxu1 %v1885_v59  ;;  %1251 = vmatpush1.bf16.msra.mxu0 %v1907_v12  ;;  %v1934_v59 = vld [vmem:[#allocation11 + $0x28] ss:$16 sps:$4 sm:$0xff]  }
 0x238   :  { %1252 = vmatprep.subr.bf16.mxu0 %v1915_v13  ;;  %v1947_v12 = vld [vmem:[#allocation13 + $0x68] sm:$0xff]  }
 0x239   :  { %v1948_v13 = vld [vmem:[#allocation13 + $0x28] sm:$0xff]  }
 0x23a   :  { %1717 = vmatpush3.bf16.msra.mxu1 %v1886_v60  ;;  %v1939_v60 = vld [vmem:[#allocation11 + $0x4] ss:$16 sps:$4 sm:$0xff]  }
 0x23b   :  { %1718 = vmatprep.subr.bf16.mxu1 %v1887_v61  ;;  %1253 = vmatpush1.bf16.msra.mxu0 %v1913_v14  ;;  %v1942_v61 = vld [vmem:[#allocation11 + $0xc] ss:$16 sps:$4 sm:$0xff]   ;;  %v1950_v14 = vld [vmem:[#allocation13 + $0x20] sm:$0xff]  }
 0x23c   :  { %1254 = vmatprep.subr.bf16.mxu0 %v1921_v15  ;;  %v1951_v15 = vld [vmem:[#allocation13 + $0x58] sm:$0xff]  }
 0x23e   :  { %1719 = vmatpush3.bf16.msra.mxu1 %v1888_v62  ;;  %v1937_v62 = vld [vmem:[#allocation11] ss:$16 sps:$4 sm:$0xff]  }
 0x23f   :  { %1720 = vmatprep.subr.bf16.mxu1 %v1889_v63  ;;  %1255 = vmatpush1.bf16.msra.mxu0 %v1919_v16  ;;  %v1940_v63 = vld [vmem:[#allocation11 + $0x8] ss:$16 sps:$4 sm:$0xff]  }
 0x240   :  { %1256 = vmatprep.subr.bf16.mxu0 %v1927_v17  ;;  %v1952_v16 = vld [vmem:[#allocation13 + $0x18] sm:$0xff]   ;;  %v1953_v17 = vld [vmem:[#allocation13 + $0x50] sm:$0xff]  }
 0x242   :  { %1721 = vmatpush3.bf16.msra.mxu1 %v1890_v1 }
 0x243   :  { %1722 = vmatprep.subr.bf16.mxu1 %v1891_v2  ;;  %1257 = vmatpush1.bf16.msra.mxu0 %v1925_v18  ;;  %v1954_v18 = vld [vmem:[#allocation13 + $0x10] sm:$0xff]  }
 0x244   :  { %1258 = vmatprep.subr.bf16.mxu0 %v1933_v29 }
 0x246   :  { %1723 = vmatpush3.bf16.msra.mxu1 %v1892_v3 }
 0x247   :  { %1724 = vmatprep.subr.bf16.mxu1 %v1893_v4  ;;  %1259 = vmatpush1.bf16.msra.mxu0 %v1931_v58 }
 0x248   :  { %1260 = vmatprep.subr.bf16.mxu0 %v1939_v60 }
 0x24a   :  { %1725 = vmatpush3.bf16.msra.mxu1 %v1894_v5 }
 0x24b   :  { %1287 = vmatprep.subr.bf16.mxu1 %v1900_v8  ;;  %1261 = vmatpush1.bf16.msra.mxu0 %v1937_v62  ;;  %v1943_v8 = vld [vmem:[#allocation13 + $0x78] sm:$0xff]  }
 0x24c   :  { %1732 = vmatprep.subr.bf16.mxu0 %v1943_v8 }
 0x2ed   :  { %v815_v19 = vpop.f32.mrf.mxu1  ;;  %v856_v20 = vpop.f32.mrf.mxu0 }
 0x2ee   :  { %v863_v21 = vpack.c.bf16 %v815_v19, %v815_v19  ;;  %v881_v43 = vpack.c.bf16 %v856_v20, %v856_v20  ;;  %v1955_v19 = vld [vmem:[#allocation13 + $0x48] sm:$0xff]  }
 0x2ef   :  { %v817_v22 = vpop.f32.mrf.mxu1  ;;  %v858_v23 = vpop.f32.mrf.mxu0  ;;  %v1956_v20 = vld [vmem:[#allocation13 + $0x8] sm:$0xff]  }
 0x2f0   :  { %v1620_v24 = vmul.bf16 3216621497, %v863_v21  ;;  %v864_v25 = vpack.c.bf16 %v817_v22, %v817_v22  ;;  %v882_v42 = vpack.c.bf16 %v858_v23, %v858_v23  ;;  %v1958_v22 = vld [vmem:[#allocation13] sm:$0xff]  }
 0x2f1   :  { %v819_v26 = vpop.f32.mrf.mxu1  ;;  %v860_v27 = vpop.f32.mrf.mxu0 }
 0x2f2   :  { %1967 = vpow.bf16 %v1620_v24  ;;  %v1621_v28 = vmul.bf16 3216621497, %v864_v25 }
 0x2f3   :  { %v820_v30 = vpop.f32.mrf.mxu1  ;;  %v861_v31 = vpop.f32.mrf.mxu0 }
 0x2f4   :  { %1969 = vpow.bf16 %v1621_v28 }
 0x300   :  { %v1968_v32 = vpop.eup %1967 }
 0x301   :  { %v873_v33 = vadd.bf16 1065369472, %v1968_v32 }
 0x302   :  { %v1970_v34 = vpop.eup %1969 }
 0x303   :  { %1971 = vrcp.bf16 %v873_v33  ;;  %v874_v35 = vadd.bf16 1065369472, %v1970_v34 }
 0x305   :  { %1973 = vrcp.bf16 %v874_v35 }
 0x311   :  { %v1972_v36 = vpop.eup %1971 }
 0x312   :  { %v876_v37 = vmul.bf16 1065369472, %v1972_v36 }
 0x313   :  { %v1974_v38 = vpop.eup %1973 }
 0x314   :  { %v878_v39 = vmul.bf16 1065369472, %v1974_v38  ;;  %v879_v40 = vmul.bf16 %v876_v37, %v863_v21  ;;  %v1957_v21 = vld [vmem:[#allocation13 + $0x40] sm:$0xff]  }
 0x316   :  { %v880_v41 = vmul.bf16 %v878_v39, %v864_v25  ;;  %v883_v46 = vmul.bf16 %v881_v43, %v879_v40 }
 0x318   :  { %v884_v44 = vmul.bf16 %v882_v42, %v880_v41 }
 0x31a   :  { %1045 = vmatprep.mubr.bf16.mxu1 %v884_v44 }
 0x31b   :  { %1046 = vmatmul.mubr.bf16.vlgmr.msra.gmra.mxu1 %v883_v46 }
 0x31c   :  { %1288 = vmatpush1.bf16.msra.mxu1 %v1898_v45  ;;  %1319 = vmatprep.mubr.bf16.mxu1 %v2164_v0  ;;  %v1936_v0 = vld [vmem:[#allocation11 + $0x2c] ss:$16 sps:$4 sm:$0xff]  }
 0x31d   :  { %1289 = vmatprep.subr.bf16.mxu1 %v1906_v47 }
 0x320   :  { %1290 = vmatpush1.bf16.msra.mxu1 %v1904_v48 }
 0x321   :  { %1291 = vmatprep.subr.bf16.mxu1 %v1912_v49 }
 0x324   :  { %1292 = vmatpush1.bf16.msra.mxu1 %v1910_v50 }
 0x325   :  { %1293 = vmatprep.subr.bf16.mxu1 %v1918_v52 }
 0x328   :  { %1294 = vmatpush1.bf16.msra.mxu1 %v1916_v53 }
 0x329   :  { %1295 = vmatprep.subr.bf16.mxu1 %v1924_v54 }
 0x32c   :  { %1296 = vmatpush1.bf16.msra.mxu1 %v1922_v55 }
 0x32d   :  { %1297 = vmatprep.subr.bf16.mxu1 %v1930_v56 }
 0x330   :  { %1298 = vmatpush1.bf16.msra.mxu1 %v1928_v57 }
 0x331   :  { %1299 = vmatprep.subr.bf16.mxu1 %v1936_v0 }
 0x334   :  { %1300 = vmatpush1.bf16.msra.mxu1 %v1934_v59 }
 0x335   :  { %1301 = vmatprep.subr.bf16.mxu1 %v1942_v61 }
 0x338   :  { %1302 = vmatpush1.bf16.msra.mxu1 %v1940_v63 }
 0x3db   :  { %v1726_v1 = vpop.f32.mrf.mxu1 }
 0x3dd   :  { %v1727_v2 = vpop.f32.mrf.mxu1 }
 0x3de   :  { %v1728_v3 = vadd.f32 %v1727_v2, %v1726_v1 }
 0x3df   :  { %v1729_v4 = vpop.f32.mrf.mxu1 }
 0x3e0   :  { %v2243_v5 = vadd.f32 %v1728_v3, %v2236_v51  ;;  %v1949_v51 = vld [vmem:[#allocation13 + $0x60] sm:$0xff]  }
 0x3e1   :  { %v1730_v6 = vpop.f32.mrf.mxu1 }
 0x3e2   :  { %v1053_v7 = vpack.c.bf16 %v2243_v5, %v2243_v5 }
 0x3e4   :  { %1279 = vmatmul.mubr.bf16.vlgmr.msra.gmra.mxu0 %v1053_v7  ;;  %1320 = vmatmul.mubr.bf16.vlgmr.msra.gmra.mxu1 %v1053_v7 }
 0x3e5   :  { %1733 = vmatpush3.bf16.msra.mxu0 %v1944_v9 }
 0x3e6   :  { %1734 = vmatprep.subr.bf16.mxu0 %v1945_v10 }
 0x3e9   :  { %1735 = vmatpush3.bf16.msra.mxu0 %v1946_v11 }
 0x3ea   :  { %1736 = vmatprep.subr.bf16.mxu0 %v1947_v12 }
 0x3ed   :  { %1737 = vmatpush3.bf16.msra.mxu0 %v1948_v13 }
 0x3ee   :  { %1738 = vmatprep.subr.bf16.mxu0 %v1949_v51 }
 0x3f1   :  { %1739 = vmatpush3.bf16.msra.mxu0 %v1950_v14 }
 0x3f2   :  { %1740 = vmatprep.subr.bf16.mxu0 %v1951_v15 }
 0x3f5   :  { %1741 = vmatpush3.bf16.msra.mxu0 %v1952_v16 }
 0x3f6   :  { %1742 = vmatprep.subr.bf16.mxu0 %v1953_v17 }
 0x3f9   :  { %1743 = vmatpush3.bf16.msra.mxu0 %v1954_v18 }
 0x3fa   :  { %1744 = vmatprep.subr.bf16.mxu0 %v1955_v19 }
 0x3fd   :  { %1745 = vmatpush3.bf16.msra.mxu0 %v1956_v20 }
 0x3fe   :  { %1746 = vmatprep.subr.bf16.mxu0 %v1957_v21 }
 0x401   :  { %1747 = vmatpush3.bf16.msra.mxu0 %v1958_v22 }
 0x4a4   :  { %v1280_v23 = vpop.f32.mrf.mxu0  ;;  %v1321_v24 = vpop.f32.mrf.mxu1 }
 0x4a5   :  { %v1328_v25 = vpack.c.bf16 %v1280_v23, %v1280_v23  ;;  %v1346_v47 = vpack.c.bf16 %v1321_v24, %v1321_v24 }
 0x4a6   :  { %v1282_v26 = vpop.f32.mrf.mxu0  ;;  %v1323_v27 = vpop.f32.mrf.mxu1 }
 0x4a7   :  { %v1670_v28 = vmul.bf16 3216621497, %v1328_v25  ;;  %v1329_v30 = vpack.c.bf16 %v1282_v26, %v1282_v26  ;;  %v1347_v46 = vpack.c.bf16 %v1323_v27, %v1323_v27 }
 0x4a8   :  { %v1284_v31 = vpop.f32.mrf.mxu0  ;;  %v1325_v32 = vpop.f32.mrf.mxu1 }
 0x4a9   :  { %1975 = vpow.bf16 %v1670_v28  ;;  %v1671_v33 = vmul.bf16 3216621497, %v1329_v30 }
 0x4aa   :  { %v1285_v34 = vpop.f32.mrf.mxu0  ;;  %v1326_v35 = vpop.f32.mrf.mxu1 }
 0x4ab   :  { %1977 = vpow.bf16 %v1671_v33 }
 0x4b7   :  { %v1976_v36 = vpop.eup %1975 }
 0x4b8   :  { %v1338_v37 = vadd.bf16 1065369472, %v1976_v36 }
 0x4b9   :  { %v1978_v38 = vpop.eup %1977 }
 0x4ba   :  { %1979 = vrcp.bf16 %v1338_v37  ;;  %v1339_v39 = vadd.bf16 1065369472, %v1978_v38 }
 0x4bc   :  { %1981 = vrcp.bf16 %v1339_v39 }
 0x4c8   :  { %v1980_v40 = vpop.eup %1979 }
 0x4c9   :  { %v1341_v41 = vmul.bf16 1065369472, %v1980_v40 }
 0x4ca   :  { %v1982_v42 = vpop.eup %1981 }
 0x4cb   :  { %v1343_v43 = vmul.bf16 1065369472, %v1982_v42  ;;  %v1344_v44 = vmul.bf16 %v1341_v41, %v1328_v25 }
 0x4cd   :  { %v1345_v45 = vmul.bf16 %v1343_v43, %v1329_v30  ;;  %v1348_v49 = vmul.bf16 %v1346_v47, %v1344_v44 }
 0x4cf   :  { %v1349_v48 = vmul.bf16 %v1347_v46, %v1345_v45 }
 0x4d1   :  { %1510 = vmatprep.mubr.bf16.mxu0 %v1349_v48 }
 0x4d2   :  { %1511 = vmatmul.mubr.bf16.vlgmr.msra.gmra.mxu0 %v1348_v49 }
 0x592   :  { %v1748_v50 = vpop.f32.mrf.mxu0 }
 0x594   :  { %v1749_v52 = vpop.f32.mrf.mxu0 }
 0x595   :  { %v1750_v53 = vadd.f32 %v1749_v52, %v1748_v50 }
 0x596   :  { %v1751_v54 = vpop.f32.mrf.mxu0 }
 0x597   :  { %v1513_v55 = vadd.f32 %v1750_v53, %v2243_v5 }
 0x598   :  { %v1752_v56 = vpop.f32.mrf.mxu0 }
 0x599   :  { %v1518_v57 = vpack.c.bf16 %v1513_v55, %v1513_v55 }
 0x59b   :  { %1519 = vst [vmem:[#allocation14] sm:$0xf] %v1518_v57 }
 0x59c   :  { %2134 = shalt.err (!%p2131_p11)
}
 0x59d   :  { %1529 = dma.vmem_to_hbm [thread:$0]  %s1527_s6, 64, %s2258_s7, [#allocation4]  }
 0x59e   :  { %2151 = dma.done.wait [#allocation4], 64  }
 0x59f   :  { %2152 = vsyncadd [#allocation4], 4294967232 }
 0x5a0   :  { %1533 = vsyncpa [#allocation3], 1 }
 0x5a1   :  { %1534 = vsyncpa [#allocation6], 1 }
 0x5a2   :  { %1535 = vsyncpa [#allocation9], 1 }
 0x5a3   :  { %1536 = vsyncpa [#allocation12], 1 }
 0x5a4   :  { %1537 = vsyncpa [#allocation4], 1 }

</bundles_post_ra>
